<compile_context>
chip_gen: v7x
topology: tpu7x:2x2x1
jax: 0.10.0
libtpu: 0.0.40
codegen_flags: <defaults>
</compile_context>

<pallas_src>
import jax
import jax.numpy as jnp
from jax.experimental import pallas as pl
from jax.experimental.pallas import tpu as pltpu


def _linreg_kernel(x_ref, w_ref, b_ref, o_ref):
    # x_ref: (TILE_N, F) VMEM tile of the batch rows.
    # w_ref: (F, 1)     VMEM weight column, resident across the whole grid.
    # b_ref: (1, 1)     SMEM scalar bias.
    # o_ref: (TILE_N, 1) VMEM output column block.
    y = jnp.dot(x_ref[...], w_ref[...], preferred_element_type=jnp.float32)  # MXU
    o_ref[...] = (y + b_ref[0, 0]).astype(o_ref.dtype)


def _round_up(v, m):
    return -(-v // m) * m


def linear_regression_forward(x, w, b, *, tile_n=None):
    """x: (N, F) f32, w: (F, 1) f32, b: (1, 1) f32 -> (N, 1) f32."""
    N, F = x.shape
    x = x.astype(jnp.float32)
    w_col = jnp.asarray(w, jnp.float32).reshape(F, 1)
    b_s = jnp.asarray(b, jnp.float32).reshape(1, 1)

    if tile_n is None:
        # ~2 MiB row tiles to amortize the ~0.35 us per-grid-step overhead,
        # but keep >= ~8 grid steps when N is large (pipeline depth + both
        # v7x TensorCores busy).  Clamp to the (8-rounded) batch for tiny N.
        tile_n = min(16384, max(512, pl.next_power_of_2(pl.cdiv(N, 8))))
    tile_n = int(min(tile_n, _round_up(N, 8)))
    tile_n = max(8, _round_up(tile_n, 8))        # sublane-aligned row tile

    num_tiles = pl.cdiv(N, tile_n)               # partial last block handled by Pallas

    out = pl.pallas_call(
        _linreg_kernel,
        out_shape=jax.ShapeDtypeStruct((N, 1), jnp.float32),
        grid=(num_tiles,),
        in_specs=[
            pl.BlockSpec((tile_n, F), lambda i: (i, 0)),           # x row tile (double-buffered)
            pl.BlockSpec((F, 1), lambda i: (0, 0)),                # weight column (resident)
            pl.BlockSpec(memory_space=pltpu.MemorySpace.SMEM),     # bias scalar
        ],
        out_specs=pl.BlockSpec((tile_n, 1), lambda i: (i, 0)),     # (TILE_N, 1) column block
        compiler_params=pltpu.CompilerParams(
            dimension_semantics=("parallel",),   # shard N across TCs (v7x megacore)
        ),
    )(x, w_col, b_s)
    return out


def init_params(key, in_features):
    # Deterministic init mimicking nn.Linear default: U(-1/sqrt(F), 1/sqrt(F)).
    kw, kb = jax.random.split(key)
    bound = 1.0 / jnp.sqrt(jnp.float32(in_features))
    w = jax.random.uniform(kw, (in_features, 1), jnp.float32, -bound, bound)
    b = jax.random.uniform(kb, (1, 1), jnp.float32, -bound, bound)
    return w, b


if __name__ == "__main__":
    key = jax.random.PRNGKey(0)
    kx, kp, kx2 = jax.random.split(key, 3)

    # Small shape matching the module: batch=8, in_features=32.
    N, F = 8, 32
    x = jax.random.normal(kx, (N, F), jnp.float32)
    w, b = init_params(kp, F)

    out = jax.block_until_ready(linear_regression_forward(x, w, b))
    ref = x @ w + b
    assert out.shape == (N, 1)
    assert jnp.allclose(out, ref, atol=1e-5, rtol=1e-5), "mismatch vs reference (small)"

    # Secondary check: multi-tile grid with a partial (non-divisible) last block.
    N2 = 1152                      # 1152 / 256 -> 4 full tiles + 1 partial tile
    x2 = jax.random.normal(kx2, (N2, F), jnp.float32)
    out2 = jax.block_until_ready(linear_regression_forward(x2, w, b, tile_n=256))
    ref2 = x2 @ w + b
    assert out2.shape == (N2, 1)
    assert jnp.allclose(out2, ref2, atol=1e-5, rtol=1e-5), "mismatch vs reference (tiled)"

    print("KERNEL_OK")
</pallas_src>

<mosaic_0001>
module attributes {stable_mosaic.version = 11 : i64} {
  func.func @_linreg_kernel(%arg0: i32, %arg1: memref<8x32xf32, #tpu.memory_space<vmem>>, %arg2: memref<32x1xf32, #tpu.memory_space<vmem>>, %arg3: memref<1x1xf32, #tpu.memory_space<smem>>, %arg4: memref<8x1xf32, #tpu.memory_space<vmem>>) attributes {dimension_semantics = [#tpu.dimension_semantics<parallel>], iteration_bounds = array<i64: 1>, scalar_prefetch = 0 : i64, scratch_operands = 0 : i64, tpu.core_type = #tpu.core_type<tc>, window_params = [{transform_indices = @transform_0, window_bounds = array<i64: 8, 32>}, {pipeline_mode = #tpu.pipeline_mode<synchronous>, transform_indices = @transform_1, window_bounds = array<i64: 32, 1>}, {transform_indices = @transform_2, window_bounds = array<i64: 1, 1>}, {transform_indices = @transform_3, window_bounds = array<i64: 8, 1>}]} {
    %c0 = arith.constant 0 : index
    %c0_0 = arith.constant 0 : index
    %0 = vector.load %arg1[%c0, %c0_0] : memref<8x32xf32, #tpu.memory_space<vmem>>, vector<8x32xf32>
    %c0_1 = arith.constant 0 : index
    %c0_2 = arith.constant 0 : index
    %1 = vector.load %arg2[%c0_1, %c0_2] : memref<32x1xf32, #tpu.memory_space<vmem>>, vector<32x1xf32>
    %cst = arith.constant dense<0.000000e+00> : vector<8x1xf32>
    %2 = tpu.matmul %0, %1, %cst {dimension_numbers = #tpu.dot_dimension_numbers<[1], [0], [0], [1], [0, 0, 1, 1], [], []>} : vector<8x32xf32>, vector<32x1xf32>, vector<8x1xf32> -> vector<8x1xf32>
    %c0_3 = arith.constant 0 : index
    %c0_4 = arith.constant 0 : index
    %3 = memref.load %arg3[%c0_3, %c0_4] : memref<1x1xf32, #tpu.memory_space<smem>>
    %4 = vector.broadcast %3 : f32 to vector<8x1xf32>
    %5 = arith.addf %2, %4 : vector<8x1xf32>
    %c0_5 = arith.constant 0 : index
    %c0_6 = arith.constant 0 : index
    %6 = vector.load %arg4[%c0_5, %c0_6] : memref<8x1xf32, #tpu.memory_space<vmem>>, vector<8x1xf32>
    tpu.vector_store %arg4[%c0_5, %c0_6], %5 {strides = array<i32>} : memref<8x1xf32, #tpu.memory_space<vmem>>, vector<8x1xf32>,
    return
  }
  func.func @transform_0(%arg0: i32) -> (i32, i32) {
    %c0_i32 = arith.constant 0 : i32
    %c0_i32_0 = arith.constant 0 : i32
    return %arg0, %c0_i32 : i32, i32
  }
  func.func @transform_1(%arg0: i32) -> (i32, i32) {
    %c0_i32 = arith.constant 0 : i32
    %c0_i32_0 = arith.constant 0 : i32
    %c0_i32_1 = arith.constant 0 : i32
    return %c0_i32, %c0_i32_0 : i32, i32
  }
  func.func @transform_2(%arg0: i32) -> (i32, i32) {
    %c0_i32 = arith.constant 0 : i32
    %c0_i32_0 = arith.constant 0 : i32
    %c0_i32_1 = arith.constant 0 : i32
    return %c0_i32, %c0_i32_0 : i32, i32
  }
  func.func @transform_3(%arg0: i32) -> (i32, i32) {
    %c0_i32 = arith.constant 0 : i32
    %c0_i32_0 = arith.constant 0 : i32
    return %arg0, %c0_i32 : i32, i32
  }
}

</mosaic_0001>

<bundles_post_ra>
// kernel: tpu_custom_call.1
= control target key start
LH: loop header
LB: loop body
LE: loop exit
PB: predicated region body
PF: predicated region fallthrough
CT: control target
= control target key end

     0   :  { %v128_v0 = vmov 0.0|0.0   ;;  %vm129_vm0 = vmmov 0   ;;  %v130_v4 = vmov 0.0   ;;  %vm22_vm1 = vcmask 261120   ;;  %s172_s1 = inlined_call_operand.vmem [shape: f32[32,1], index: 1, kind: input, shape index: {}]   ;;  %s173_s0 = inlined_call_operand.vmem [shape: f32[8,32], index: 0, kind: input, shape index: {}]   ;;  %s174_s2 = inlined_call_operand.<no memory space> [shape: f32[1,1], index: 2, kind: input, shape index: {}]   ;;  %s175_s3 = inlined_call_operand.vmem [shape: f32[8,1], index: 3, kind: output, shape index: {}]  }
   0x1   :  { %119 = vmatprep.subr.bf16.mxu0 %v128_v0  ;;  %v16_v1 = vld [vmem:[%s172_s1] sm:$0xff]  ;;  %v17_v2 = vld [vmem:[%s172_s1 + $0x8] sm:$0xff]  ;;  %v18_v3 = vld [vmem:[%s172_s1 + $0x10] sm:$0xff]  ;;  %116 = vmatprep.mubr.msk.f32.mxu0 %vm129_vm0, %v130_v4  ;;  %v21_v9 = vstv %s174_s2  ;;  %vm96_vm2 = vcmask 7168  }
   0x2   :  { %v120_v5 = vpack.c.bf16 %v17_v2, %v16_v1  ;;  %v19_v6 = vld [vmem:[%s172_s1 + $0x18] sm:$0xff]  ;;  %v15_v8 = vld [vmem:[%s173_s0] sm:$0xff] }
   0x3   :  { %v123_v7 = vpack.c.bf16 %v19_v6, %v18_v3 }
   0x4   :  { %121 = vmatpush3.bf16.msra.mxu0 %v120_v5 }
   0x5   :  { %122 = vmatprep.subr.bf16.mxu0 %v128_v0 }
   0x8   :  { %124 = vmatpush3.bf16.msra.mxu0 %v123_v7 }
   0xb   :  { %117 = vmatmul.mubr.msk.f32.vlgmr.msra.gmra.mrb[0].mxu0 %vm22_vm1, %v15_v8 }
  0xde   :  { %v92_v10 = vpop.f32.mrb[0].mxu0 }
  0xdf   :  { %v93_v11 = vadd.f32 %v92_v10, %v21_v9  ;;  %v118_v12 = vpop.f32.mrb[1].mxu0 }
  0xe1   :  { %97 = vst.msk [vmem:[%s175_s3] sm:$0xff] %vm96_vm2, %v93_v11 }

</bundles_post_ra>
